<compile_context>
chip_gen: v7x
topology: tpu7x:2x2x1
jax: 0.10.0
libtpu: 0.0.40
codegen_flags: <defaults>
</compile_context>

<pallas_src>
import jax
import jax.numpy as jnp
from jax import lax
from jax.experimental import pallas as pl
from jax.experimental.pallas import tpu as pltpu


# -----------------------------------------------------------------------------
# Fused Pallas kernel: image linear + l2norm + cosine similarity
# -----------------------------------------------------------------------------
def _fused_urbancross_kernel(img_ref, w_img_ref, b_img_ref, txt_ref, o_ref):
    """img_emb = img @ w_img + b_img ; sim = l2norm(img_emb) @ l2norm(txt).T.

    Matches the PyTorch reference l2norm/cosine_sim:
        norm = sqrt(sum(X**2, dim=-1, keepdim=True)) + 1e-8
        X    = X / norm
        sim  = im @ s.T
    (torch.cuda.amp.autocast fp16 is not emulated; compute is f32. The
    division is implemented as multiply-by-EUP-reciprocal, which only differs
    in low-order bits.)
    """
    # Image embedding: single MXU matmul with f32 accumulation, bias add.
    img_emb = jnp.dot(img_ref[...], w_img_ref[...],
                      preferred_element_type=jnp.float32) + b_img_ref[...]
    txt_emb = txt_ref[...].astype(jnp.float32)

    # l2norm rows: eps added to the norm (same placement as the reference),
    # reciprocal on the EUP slot instead of full-tile VALU divides.
    im_inv = pl.reciprocal(
        jnp.sqrt(jnp.sum(img_emb * img_emb, axis=-1, keepdims=True)) + 1e-8,
        approx=True)
    tx_inv = pl.reciprocal(
        jnp.sqrt(jnp.sum(txt_emb * txt_emb, axis=-1, keepdims=True)) + 1e-8,
        approx=True)
    im_n = img_emb * im_inv
    tx_n = txt_emb * tx_inv

    # sim[i, j] = <im_n[i], tx_n[j]>: contract last axes of both operands
    # directly — avoids materializing tx_n.T through the XLU.
    sim = lax.dot_general(
        im_n, tx_n,
        dimension_numbers=(((1,), (1,)), ((), ())),
        preferred_element_type=jnp.float32)
    o_ref[...] = sim.astype(o_ref.dtype)


def fused_urbancross(img_flat, w_img, b_img, txt_feat):
    """(Bi, K), (K, D), (1, D), (Bt, D) -> (Bi, Bt) cosine similarity."""
    Bi, K = img_flat.shape
    K2, D = w_img.shape
    Bt, D2 = txt_feat.shape
    assert K == K2 and D == D2
    return pl.pallas_call(
        _fused_urbancross_kernel,
        out_shape=jax.ShapeDtypeStruct((Bi, Bt), jnp.float32),
        grid=(1,),
        in_specs=[
            pl.BlockSpec((Bi, K), lambda i: (0, 0)),
            pl.BlockSpec((K, D), lambda i: (0, 0)),
            pl.BlockSpec((1, D), lambda i: (0, 0)),
            pl.BlockSpec((Bt, D), lambda i: (0, 0)),
        ],
        out_specs=pl.BlockSpec((Bi, Bt), lambda i: (0, 0)),
        compiler_params=pltpu.CompilerParams(
            dimension_semantics=("arbitrary",)),
    )(img_flat, w_img, b_img, txt_feat)


# -----------------------------------------------------------------------------
# Model (stub CLIP towers + fused Pallas hot path)
# -----------------------------------------------------------------------------
class UrbanCrossWithoutSamPallas:
    def __init__(self, *, img_chw=(3, 16, 16), vocab=64, seq_len=8,
                 tok_dim=32, embed_dim=128, key=None):
        if key is None:
            key = jax.random.PRNGKey(0)
        k1, k2, k3 = jax.random.split(key, 3)
        C, H, W = img_chw
        self.img_in = C * H * W
        self.embed_dim = embed_dim
        self.seq_len = seq_len
        # Deterministic synthetic parameters (stand-ins for CLIP towers).
        self.w_img = (jax.random.normal(k1, (self.img_in, embed_dim),
                                        jnp.float32) * 0.02)
        self.b_img = jnp.zeros((1, embed_dim), jnp.float32)
        tok_emb = (jax.random.normal(k2, (vocab, tok_dim), jnp.float32) * 0.02)
        w_txt = (jax.random.normal(k3, (tok_dim, embed_dim),
                                   jnp.float32) * 0.02)
        self.b_txt = jnp.zeros((1, embed_dim), jnp.float32)
        # Fold the text linear into the embedding table:
        #   mean(tok_emb[text], 1) @ w_txt == mean((tok_emb @ w_txt)[text], 1)
        # so the second (badly shaped) matmul disappears entirely.
        self.w_fold = jnp.dot(tok_emb, w_txt,
                              preferred_element_type=jnp.float32)  # (V, D)

    def forward(self, img, text):
        B = img.shape[0]
        # --- stub image tower input: flatten NCHW (matmul happens in-kernel)
        img_flat = img.reshape(B, self.img_in).astype(jnp.float32)

        # --- stub text tower: gather folded table -> mean pool -> + bias
        # (data-dependent gather stays in JAX; it is tiny)
        txt_feat = jnp.mean(jnp.take(self.w_fold, text, axis=0),
                            axis=1) + self.b_txt                   # (B, D)

        # --- fused Pallas kernel: img linear + l2norm + cosine_sim
        sim_img2text = fused_urbancross(img_flat, self.w_img, self.b_img,
                                        txt_feat)
        return sim_img2text

    __call__ = forward


# -----------------------------------------------------------------------------
if __name__ == "__main__":
    key = jax.random.PRNGKey(0)
    k_img, k_txt, k_model = jax.random.split(key, 3)

    B, C, H, W = 8, 3, 16, 16
    S, VOCAB = 8, 64

    img = jax.random.normal(k_img, (B, C, H, W), jnp.float32)       # NCHW
    text = jax.random.randint(k_txt, (B, S), 0, VOCAB, jnp.int32)

    model = UrbanCrossWithoutSamPallas(img_chw=(C, H, W), vocab=VOCAB,
                                       seq_len=S, tok_dim=32,
                                       embed_dim=128, key=k_model)

    sim = model(img, text)
    sim = jax.block_until_ready(sim)
    assert sim.shape == (B, B)
    assert bool(jnp.all(jnp.isfinite(sim)))

    # Pure-JAX reference of the same stub model (l2norm/cosine_sim semantics).
    def _ref():
        img_flat = img.reshape(B, -1)
        img_emb = img_flat @ model.w_img + model.b_img
        txt_emb = jnp.mean(jnp.take(model.w_fold, text, axis=0),
                           axis=1) + model.b_txt
        def l2n(x):
            return x / (jnp.sqrt(jnp.sum(x * x, -1, keepdims=True)) + 1e-8)
        return l2n(img_emb) @ l2n(txt_emb).T

    ref = _ref()
    assert bool(jnp.allclose(sim, ref, rtol=2e-3, atol=2e-3)), (
        "mismatch vs. pure-JAX reference")
    print("KERNEL_OK")
</pallas_src>

<mosaic_0001>
module attributes {stable_mosaic.version = 11 : i64} {
  func.func @_fused_urbancross_kernel(%arg0: i32, %arg1: memref<8x768xf32, #tpu.memory_space<vmem>>, %arg2: memref<768x128xf32, #tpu.memory_space<vmem>>, %arg3: memref<1x128xf32, #tpu.memory_space<vmem>>, %arg4: memref<8x128xf32, #tpu.memory_space<vmem>>, %arg5: memref<8x8xf32, #tpu.memory_space<vmem>>) attributes {dimension_semantics = [#tpu.dimension_semantics<arbitrary>], iteration_bounds = array<i64: 1>, scalar_prefetch = 0 : i64, scratch_operands = 0 : i64, tpu.core_type = #tpu.core_type<tc>, window_params = [{pipeline_mode = #tpu.pipeline_mode<synchronous>, transform_indices = @transform_0, window_bounds = array<i64: 8, 768>}, {pipeline_mode = #tpu.pipeline_mode<synchronous>, transform_indices = @transform_1, window_bounds = array<i64: 768, 128>}, {pipeline_mode = #tpu.pipeline_mode<synchronous>, transform_indices = @transform_2, window_bounds = array<i64: 1, 128>}, {pipeline_mode = #tpu.pipeline_mode<synchronous>, transform_indices = @transform_3, window_bounds = array<i64: 8, 128>}, {pipeline_mode = #tpu.pipeline_mode<synchronous>, transform_indices = @transform_4, window_bounds = array<i64: 8, 8>}]} {
    %c0 = arith.constant 0 : index
    %c0_0 = arith.constant 0 : index
    %0 = vector.load %arg1[%c0, %c0_0] : memref<8x768xf32, #tpu.memory_space<vmem>>, vector<8x768xf32>
    %c0_1 = arith.constant 0 : index
    %c0_2 = arith.constant 0 : index
    %1 = vector.load %arg2[%c0_1, %c0_2] : memref<768x128xf32, #tpu.memory_space<vmem>>, vector<768x128xf32>
    %cst = arith.constant dense<0.000000e+00> : vector<8x128xf32>
    %2 = tpu.matmul %0, %1, %cst {dimension_numbers = #tpu.dot_dimension_numbers<[1], [0], [0], [1], [0, 0, 1, 1], [], []>} : vector<8x768xf32>, vector<768x128xf32>, vector<8x128xf32> -> vector<8x128xf32>
    %c0_3 = arith.constant 0 : index
    %c0_4 = arith.constant 0 : index
    %3 = vector.load %arg3[%c0_3, %c0_4] : memref<1x128xf32, #tpu.memory_space<vmem>>, vector<1x128xf32>
    %4 = vector.broadcast %3 : vector<1x128xf32> to vector<8x128xf32>
    %5 = arith.addf %2, %4 : vector<8x128xf32>
    %c0_5 = arith.constant 0 : index
    %c0_6 = arith.constant 0 : index
    %6 = vector.load %arg4[%c0_5, %c0_6] : memref<8x128xf32, #tpu.memory_space<vmem>>, vector<8x128xf32>
    %7 = arith.mulf %5, %5 : vector<8x128xf32>
    %cst_7 = arith.constant dense<0.000000e+00> : vector<8xf32>
    %8 = vector.multi_reduction <add>, %7, %cst_7 [1] : vector<8x128xf32> to vector<8xf32>
    %9 = vector.shape_cast %8 : vector<8xf32> to vector<8x1xf32>
    %10 = math.sqrt %9 : vector<8x1xf32>
    %cst_8 = arith.constant 9.99999993E-9 : f32
    %11 = vector.broadcast %cst_8 : f32 to vector<8x1xf32>
    %12 = arith.addf %10, %11 : vector<8x1xf32>
    %13 = tpu.reciprocal %12 {approx = true} : vector<8x1xf32> -> vector<8x1xf32>
    %14 = arith.mulf %6, %6 : vector<8x128xf32>
    %cst_9 = arith.constant dense<0.000000e+00> : vector<8xf32>
    %15 = vector.multi_reduction <add>, %14, %cst_9 [1] : vector<8x128xf32> to vector<8xf32>
    %16 = vector.shape_cast %15 : vector<8xf32> to vector<8x1xf32>
    %17 = math.sqrt %16 : vector<8x1xf32>
    %cst_10 = arith.constant 9.99999993E-9 : f32
    %18 = vector.broadcast %cst_10 : f32 to vector<8x1xf32>
    %19 = arith.addf %17, %18 : vector<8x1xf32>
    %20 = tpu.reciprocal %19 {approx = true} : vector<8x1xf32> -> vector<8x1xf32>
    %21 = vector.broadcast %13 : vector<8x1xf32> to vector<8x128xf32>
    %22 = arith.mulf %5, %21 : vector<8x128xf32>
    %23 = vector.broadcast %20 : vector<8x1xf32> to vector<8x128xf32>
    %24 = arith.mulf %6, %23 : vector<8x128xf32>
    %cst_11 = arith.constant dense<0.000000e+00> : vector<8x8xf32>
    %25 = tpu.matmul %22, %24, %cst_11 {dimension_numbers = #tpu.dot_dimension_numbers<[1], [1], [0], [0], [0, 0, 1, 0], [], []>} : vector<8x128xf32>, vector<8x128xf32>, vector<8x8xf32> -> vector<8x8xf32>
    %c0_12 = arith.constant 0 : index
    %c0_13 = arith.constant 0 : index
    %26 = vector.load %arg5[%c0_12, %c0_13] : memref<8x8xf32, #tpu.memory_space<vmem>>, vector<8x8xf32>
    tpu.vector_store %arg5[%c0_12, %c0_13], %25 {strides = array<i32>} : memref<8x8xf32, #tpu.memory_space<vmem>>, vector<8x8xf32>,
    return
  }
  func.func @transform_0(%arg0: i32) -> (i32, i32) {
    %c0_i32 = arith.constant 0 : i32
    %c0_i32_0 = arith.constant 0 : i32
    %c0_i32_1 = arith.constant 0 : i32
    return %c0_i32, %c0_i32_0 : i32, i32
  }
  func.func @transform_1(%arg0: i32) -> (i32, i32) {
    %c0_i32 = arith.constant 0 : i32
    %c0_i32_0 = arith.constant 0 : i32
    %c0_i32_1 = arith.constant 0 : i32
    return %c0_i32, %c0_i32_0 : i32, i32
  }
  func.func @transform_2(%arg0: i32) -> (i32, i32) {
    %c0_i32 = arith.constant 0 : i32
    %c0_i32_0 = arith.constant 0 : i32
    %c0_i32_1 = arith.constant 0 : i32
    return %c0_i32, %c0_i32_0 : i32, i32
  }
  func.func @transform_3(%arg0: i32) -> (i32, i32) {
    %c0_i32 = arith.constant 0 : i32
    %c0_i32_0 = arith.constant 0 : i32
    %c0_i32_1 = arith.constant 0 : i32
    return %c0_i32, %c0_i32_0 : i32, i32
  }
  func.func @transform_4(%arg0: i32) -> (i32, i32) {
    %c0_i32 = arith.constant 0 : i32
    %c0_i32_0 = arith.constant 0 : i32
    %c0_i32_1 = arith.constant 0 : i32
    return %c0_i32, %c0_i32_0 : i32, i32
  }
}

</mosaic_0001>

<bundles_post_ra>
// kernel: tpu_custom_call.1
= control target key start
LH: loop header
LB: loop body
LE: loop exit
PB: predicated region body
PF: predicated region fallthrough
CT: control target
= control target key end

     0   :  { %9 = vsyncpa [#allocation3], 0  ;;  %s855_s0 = inlined_call_operand.hbm [shape: f32[8,768], index: 0, kind: input, shape index: {}]   ;;  %s856_s1 = inlined_call_operand.hbm [shape: f32[768,128], index: 1, kind: input, shape index: {}]   ;;  %s857_s2 = inlined_call_operand.vmem [shape: f32[1,128], index: 2, kind: input, shape index: {}]   ;;  %s858_s3 = inlined_call_operand.vmem [shape: f32[8,128], index: 3, kind: input, shape index: {}]   ;;  %s859_s4 = inlined_call_operand.hbm [shape: f32[8,8], index: 4, kind: output, shape index: {}]  }
   0x1   :  { %10 = vsyncpa [#allocation6], 0 }
   0x2   :  { %11 = vsyncpa [#allocation4], 0  ;;  %s774_s15 = smov [#allocation2]   ;;  %s775_s17 = smov [#allocation5]  }
   0x3   :  { %s18_s16 = sshll.u32 %s774_s15, 4  ;;  %s27_s18 = sshll.u32 %s775_s17, 4  ;;  %s19_s16 = int_to_ptr.vmem [resolvable:$true] %s18_s16  ;;  %s806_s18 = int_to_ptr.vmem [resolvable:$true] %s27_s18 }
   0x4   :  { %s702_s21 = scalar_lea.hbm %s855_s0, 768 }
   0x5   :  { %p703_p0 = scmp.ne.s32.totalorder %s855_s0, %s702_s21  ;;  %p706_p1 = scmp.lt.u32.totalorder %s702_s21, %s855_s0 }
   0x7   :  { %p708_p2 = pnand %p706_p1, %p703_p0 }
   0x9   :  { %711 = shalt.err (!%p708_p2)
}
   0xa   :  { %s712_s26 = scalar_lea.vmem %s19_s16, 768  ;;  %p717_p4 = scmp.lt.s32.totalorder %s19_s16, %s19_s16 }
   0xb   :  { %p713_p3 = scmp.ne.s32.totalorder %s19_s16, %s712_s26  ;;  %p718_p5 = scmp.lt.s32.totalorder %s712_s26, %s712_s26 }
   0xd   :  { %p719_p6 = por %p718_p5, %p717_p4 }
   0xf   :  { %p720_p7 = pnand %p719_p6, %p713_p3 }
  0x11   :  { %723 = shalt.err (!%p720_p7)
}
  0x12   :  { %21 = dma.hbm_to_vmem [thread:$0]  %s855_s0, 768, %s19_s16, [#allocation3]  }
  0x13   :  { %s724_s5 = scalar_lea.hbm %s856_s1, 12288 }
  0x14   :  { %p725_p8 = scmp.ne.s32.totalorder %s856_s1, %s724_s5  ;;  %p728_p9 = scmp.lt.u32.totalorder %s724_s5, %s856_s1 }
  0x16   :  { %p730_p10 = pnand %p728_p9, %p725_p8 }
  0x18   :  { %733 = shalt.err (!%p730_p10)
}
  0x19   :  { %s734_s10 = scalar_lea.vmem %s806_s18, 12288  ;;  %p739_p12 = scmp.lt.s32.totalorder %s806_s18, %s806_s18 }
  0x1a   :  { %p735_p11 = scmp.ne.s32.totalorder %s806_s18, %s734_s10  ;;  %p740_p13 = scmp.lt.s32.totalorder %s734_s10, %s734_s10 }
  0x1c   :  { %p741_p0 = por %p740_p13, %p739_p12 }
  0x1e   :  { %p742_p1 = pnand %p741_p0, %p735_p11 }
  0x20   :  { %745 = shalt.err (!%p742_p1)
}
  0x21   :  { %s776_s0 = smov 128   ;;  %s777_s11 = smov 8  }
  0x22   :  { %33 = dma.hbm_to_vmem [thread:$0]  %s856_s1, 12288, %s806_s18, [#allocation6], %s776_s0, %s776_s0, %s777_s11  }
  0x23   :  { %768 = dma.done.wait [#allocation3], 768  }
  0x24   :  { %769 = vsyncadd [#allocation3], 4294966528 }
  0x25   :  { %770 = dma.done.wait [#allocation6], 12288  }
  0x26   :  { %771 = vsyncadd [#allocation6], 4294955008  ;;  %v66_v0 = vld [vmem:[#allocation5 + $0x80] sm:$0xff]  ;;  %v67_v1 = vld [vmem:[#allocation5 + $0x88] sm:$0xff]  ;;  %vm779_vm2 = vmmov 0   ;;  %vm460_vm5 = vcmask 64512  }
  0x27   :  { %v50_v2 = vld [vmem:[#allocation5] sm:$0xff]  ;;  %v591_v3 = vpack.c.bf16 %v67_v1, %v66_v0  ;;  %v51_v4 = vld [vmem:[#allocation5 + $0x8] sm:$0xff]  ;;  %v68_v11 = vld [vmem:[#allocation5 + $0x90] sm:$0xff] }
  0x28   :  { %v98_v5 = vld [vmem:[#allocation5 + $0x180] sm:$0xff]  ;;  %v99_v6 = vld [vmem:[#allocation5 + $0x188] sm:$0xff]  ;;  %v593_v7 = vpack.c.bf16 %v51_v4, %v50_v2  ;;  %v69_v13 = vld [vmem:[#allocation5 + $0x98] sm:$0xff] }
  0x29   :  { %v623_v8 = vpack.c.bf16 %v99_v6, %v98_v5  ;;  %v82_v9 = vld [vmem:[#allocation5 + $0x100] sm:$0xff]  ;;  %v83_v10 = vld [vmem:[#allocation5 + $0x108] sm:$0xff]  ;;  %592 = vmatprep.subr.bf16.mxu0 %v591_v3  ;;  %v52_v14 = vld [vmem:[#allocation5 + $0x10] sm:$0xff]  ;;  %v595_v16 = vpack.c.bf16 %v69_v13, %v68_v11 }
  0x2a   :  { %v625_v12 = vpack.c.bf16 %v83_v10, %v82_v9  ;;  %v53_v15 = vld [vmem:[#allocation5 + $0x18] sm:$0xff]  ;;  %594 = vmatpush3.bf16.msra.mxu0 %v593_v7  ;;  %v100_v18 = vld [vmem:[#allocation5 + $0x190] sm:$0xff]  ;;  %v70_v23 = vld [vmem:[#allocation5 + $0xa0] sm:$0xff] }
  0x2b   :  { %624 = vmatprep.subr.bf16.mxu1 %v623_v8  ;;  %v597_v17 = vpack.c.bf16 %v53_v15, %v52_v14  ;;  %v101_v19 = vld [vmem:[#allocation5 + $0x198] sm:$0xff]  ;;  %v84_v20 = vld [vmem:[#allocation5 + $0x110] sm:$0xff]  ;;  %v71_v24 = vld [vmem:[#allocation5 + $0xa8] sm:$0xff]  ;;  %596 = vmatprep.subr.bf16.mxu0 %v595_v16 }
  0x2c   :  { %626 = vmatpush3.bf16.msra.mxu1 %v625_v12  ;;  %v627_v21 = vpack.c.bf16 %v101_v19, %v100_v18  ;;  %v85_v22 = vld [vmem:[#allocation5 + $0x118] sm:$0xff]  ;;  %v599_v26 = vpack.c.bf16 %v71_v24, %v70_v23  ;;  %v54_v27 = vld [vmem:[#allocation5 + $0x20] sm:$0xff]  ;;  %v55_v28 = vld [vmem:[#allocation5 + $0x28] sm:$0xff] }
  0x2d   :  { %v629_v25 = vpack.c.bf16 %v85_v22, %v84_v20  ;;  %v102_v29 = vld [vmem:[#allocation5 + $0x1a0] sm:$0xff]  ;;  %v103_v30 = vld [vmem:[#allocation5 + $0x1a8] sm:$0xff]  ;;  %v601_v33 = vpack.c.bf16 %v55_v28, %v54_v27  ;;  %v72_v35 = vld [vmem:[#allocation5 + $0xb0] sm:$0xff] }
  0x2e   :  { %628 = vmatprep.subr.bf16.mxu1 %v627_v21  ;;  %v86_v31 = vld [vmem:[#allocation5 + $0x120] sm:$0xff]  ;;  %v87_v32 = vld [vmem:[#allocation5 + $0x128] sm:$0xff]  ;;  %598 = vmatpush3.bf16.msra.mxu0 %v597_v17  ;;  %v631_v34 = vpack.c.bf16 %v103_v30, %v102_v29  ;;  %v73_v36 = vld [vmem:[#allocation5 + $0xb8] sm:$0xff] }
  0x2f   :  { %v56_v37 = vld [vmem:[#allocation5 + $0x30] sm:$0xff]  ;;  %600 = vmatprep.subr.bf16.mxu0 %v599_v26  ;;  %v633_v38 = vpack.c.bf16 %v87_v32, %v86_v31  ;;  %v603_v39 = vpack.c.bf16 %v73_v36, %v72_v35  ;;  %v57_v40 = vld [vmem:[#allocation5 + $0x38] sm:$0xff]  ;;  %v74_v46 = vld [vmem:[#allocation5 + $0xc0] sm:$0xff] }
  0x30   :  { %630 = vmatpush3.bf16.msra.mxu1 %v629_v25  ;;  %v104_v41 = vld [vmem:[#allocation5 + $0x1b0] sm:$0xff]  ;;  %v105_v42 = vld [vmem:[#allocation5 + $0x1b8] sm:$0xff]  ;;  %v75_v47 = vld [vmem:[#allocation5 + $0xc8] sm:$0xff]  ;;  %v605_v48 = vpack.c.bf16 %v57_v40, %v56_v37 }
  0x31   :  { %632 = vmatprep.subr.bf16.mxu1 %v631_v34  ;;  %v635_v43 = vpack.c.bf16 %v105_v42, %v104_v41  ;;  %v88_v44 = vld [vmem:[#allocation5 + $0x130] sm:$0xff]  ;;  %v89_v45 = vld [vmem:[#allocation5 + $0x138] sm:$0xff]  ;;  %v106_v49 = vld [vmem:[#allocation5 + $0x1c0] sm:$0xff]  ;;  %v607_v52 = vpack.c.bf16 %v75_v47, %v74_v46 }
  0x32   :  { %602 = vmatpush3.bf16.msra.mxu0 %v601_v33  ;;  %v107_v50 = vld [vmem:[#allocation5 + $0x1c8] sm:$0xff]  ;;  %v637_v51 = vpack.c.bf16 %v89_v45, %v88_v44  ;;  %v58_v53 = vld [vmem:[#allocation5 + $0x40] sm:$0xff]  ;;  %v76_v58 = vld [vmem:[#allocation5 + $0xd0] sm:$0xff] }
  0x33   :  { %604 = vmatprep.subr.bf16.mxu0 %v603_v39  ;;  %v59_v54 = vld [vmem:[#allocation5 + $0x48] sm:$0xff]  ;;  %v90_v55 = vld [vmem:[#allocation5 + $0x140] sm:$0xff]  ;;  %v639_v56 = vpack.c.bf16 %v107_v50, %v106_v49  ;;  %v77_v59 = vld [vmem:[#allocation5 + $0xd8] sm:$0xff] }
  0x34   :  { %634 = vmatpush3.bf16.msra.mxu1 %v633_v38  ;;  %v91_v57 = vld [vmem:[#allocation5 + $0x148] sm:$0xff]  ;;  %v108_v60 = vld [vmem:[#allocation5 + $0x1d0] sm:$0xff]  ;;  %v109_v61 = vld [vmem:[#allocation5 + $0x1d8] sm:$0xff]  ;;  %v609_v62 = vpack.c.bf16 %v59_v54, %v58_v53  ;;  %v611_v0 = vpack.c.bf16 %v77_v59, %v76_v58 }
  0x35   :  { %636 = vmatprep.subr.bf16.mxu1 %v635_v43  ;;  %v641_v63 = vpack.c.bf16 %v91_v57, %v90_v55  ;;  %v60_v1 = vld [vmem:[#allocation5 + $0x50] sm:$0xff]  ;;  %v61_v2 = vld [vmem:[#allocation5 + $0x58] sm:$0xff]  ;;  %v643_v4 = vpack.c.bf16 %v109_v61, %v108_v60  ;;  %v78_v6 = vld [vmem:[#allocation5 + $0xe0] sm:$0xff] }
  0x36   :  { %606 = vmatpush3.bf16.msra.mxu0 %v605_v48  ;;  %v92_v3 = vld [vmem:[#allocation5 + $0x150] sm:$0xff]  ;;  %v93_v5 = vld [vmem:[#allocation5 + $0x158] sm:$0xff]  ;;  %v79_v7 = vld [vmem:[#allocation5 + $0xe8] sm:$0xff]  ;;  %v613_v10 = vpack.c.bf16 %v61_v2, %v60_v1 }
  0x37   :  { %608 = vmatprep.subr.bf16.mxu0 %v607_v52  ;;  %v110_v8 = vld [vmem:[#allocation5 + $0x1e0] sm:$0xff]  ;;  %v111_v9 = vld [vmem:[#allocation5 + $0x1e8] sm:$0xff]  ;;  %v45_v12 = vld [vmem:[#allocation2 + $0x8] sm:$0xff]  ;;  %v645_v13 = vpack.c.bf16 %v93_v5, %v92_v3  ;;  %v615_v14 = vpack.c.bf16 %v79_v7, %v78_v6 }
  0x38   :  { %638 = vmatpush3.bf16.msra.mxu1 %v637_v51  ;;  %v62_v11 = vld [vmem:[#allocation5 + $0x60] sm:$0xff]  ;;  %v63_v15 = vld [vmem:[#allocation5 + $0x68] sm:$0xff]  ;;  %v647_v18 = vpack.c.bf16 %v111_v9, %v110_v8  ;;  %v80_v19 = vld [vmem:[#allocation5 + $0xf0] sm:$0xff]  ;;  %217 = vmatprep.mubr.f32.mxu0 %v45_v12 }
  0x39   :  { %640 = vmatprep.subr.bf16.mxu1 %v639_v56  ;;  %v94_v16 = vld [vmem:[#allocation5 + $0x160] sm:$0xff]  ;;  %v95_v17 = vld [vmem:[#allocation5 + $0x168] sm:$0xff]  ;;  %v81_v20 = vld [vmem:[#allocation5 + $0xf8] sm:$0xff]  ;;  %v617_v24 = vpack.c.bf16 %v63_v15, %v62_v11 }
  0x3a   :  { %610 = vmatpush3.bf16.msra.mxu0 %v609_v62  ;;  %v47_v21 = vld [vmem:[#allocation2 + $0x18] sm:$0xff]  ;;  %v112_v22 = vld [vmem:[#allocation5 + $0x1f0] sm:$0xff]  ;;  %v113_v23 = vld [vmem:[#allocation5 + $0x1f8] sm:$0xff]  ;;  %v649_v25 = vpack.c.bf16 %v95_v17, %v94_v16  ;;  %v619_v26 = vpack.c.bf16 %v81_v20, %v80_v19 }
  0x3b   :  { %612 = vmatprep.subr.bf16.mxu0 %v611_v0  ;;  %287 = vmatprep.mubr.f32.mxu1 %v47_v21  ;;  %v64_v27 = vld [vmem:[#allocation5 + $0x70] sm:$0xff]  ;;  %v65_v28 = vld [vmem:[#allocation5 + $0x78] sm:$0xff]  ;;  %v651_v30 = vpack.c.bf16 %v113_v23, %v112_v22  ;;  %v130_v32 = vld [vmem:[#allocation5 + $0x280] sm:$0xff] }
  0x3c   :  { %642 = vmatpush3.bf16.msra.mxu1 %v641_v63  ;;  %v96_v29 = vld [vmem:[#allocation5 + $0x170] sm:$0xff]  ;;  %v97_v31 = vld [vmem:[#allocation5 + $0x178] sm:$0xff]  ;;  %v131_v33 = vld [vmem:[#allocation5 + $0x288] sm:$0xff]  ;;  %v621_v34 = vpack.c.bf16 %v65_v28, %v64_v27 }
  0x3d   :  { %644 = vmatprep.subr.bf16.mxu1 %v643_v4  ;;  %v653_v35 = vpack.c.bf16 %v97_v31, %v96_v29  ;;  %v655_v36 = vpack.c.bf16 %v131_v33, %v130_v32  ;;  %v114_v37 = vld [vmem:[#allocation5 + $0x200] sm:$0xff]  ;;  %v115_v38 = vld [vmem:[#allocation5 + $0x208] sm:$0xff]  ;;  %v132_v39 = vld [vmem:[#allocation5 + $0x290] sm:$0xff] }
  0x3e   :  { %614 = vmatpush3.bf16.msra.mxu0 %v613_v10  ;;  %v133_v40 = vld [vmem:[#allocation5 + $0x298] sm:$0xff]  ;;  %v44_v41 = vld [vmem:[#allocation2] sm:$0xff]  ;;  %v657_v42 = vpack.c.bf16 %v115_v38, %v114_v37  ;;  %v46_v43 = vld [vmem:[#allocation2 + $0x10] sm:$0xff] }
  0x3f   :  { %616 = vmatprep.subr.bf16.mxu0 %v615_v14  ;;  %v659_v44 = vpack.c.bf16 %v133_v40, %v132_v39  ;;  %v116_v45 = vld [vmem:[#allocation5 + $0x210] sm:$0xff]  ;;  %v117_v46 = vld [vmem:[#allocation5 + $0x218] sm:$0xff]  ;;  %v134_v47 = vld [vmem:[#allocation5 + $0x2a0] sm:$0xff] }
  0x40   :  { %646 = vmatpush3.bf16.msra.mxu1 %v645_v13  ;;  %v135_v48 = vld [vmem:[#allocation5 + $0x2a8] sm:$0xff]  ;;  %v49_v49 = vld [vmem:[#allocation2 + $0x28] sm:$0xff]  ;;  %v661_v50 = vpack.c.bf16 %v117_v46, %v116_v45  ;;  %v118_v52 = vld [vmem:[#allocation5 + $0x220] sm:$0xff] }
  0x41   :  { %648 = vmatprep.subr.bf16.mxu1 %v647_v18  ;;  %v663_v51 = vpack.c.bf16 %v135_v48, %v134_v47  ;;  %v119_v53 = vld [vmem:[#allocation5 + $0x228] sm:$0xff]  ;;  %v136_v54 = vld [vmem:[#allocation5 + $0x2b0] sm:$0xff]  ;;  %v137_v55 = vld [vmem:[#allocation5 + $0x2b8] sm:$0xff]  ;;  %v778_v47 = vmov 0.0  }
  0x42   :  { %618 = vmatpush3.bf16.msra.mxu0 %v617_v24  ;;  %v665_v56 = vpack.c.bf16 %v119_v53, %v118_v52  ;;  %v667_v57 = vpack.c.bf16 %v137_v55, %v136_v54  ;;  %v120_v58 = vld [vmem:[#allocation5 + $0x230] sm:$0xff]  ;;  %v121_v59 = vld [vmem:[#allocation5 + $0x238] sm:$0xff]  ;;  %v138_v60 = vld [vmem:[#allocation5 + $0x2c0] sm:$0xff] }
  0x43   :  { %620 = vmatprep.subr.bf16.mxu0 %v619_v26  ;;  %v139_v61 = vld [vmem:[#allocation5 + $0x2c8] sm:$0xff]  ;;  %v669_v62 = vpack.c.bf16 %v121_v59, %v120_v58  ;;  %v122_v0 = vld [vmem:[#allocation5 + $0x240] sm:$0xff]  ;;  %v140_v2 = vld [vmem:[#allocation5 + $0x2d0] sm:$0xff] }
  0x44   :  { %650 = vmatpush3.bf16.msra.mxu1 %v649_v25  ;;  %v671_v63 = vpack.c.bf16 %v139_v61, %v138_v60  ;;  %v123_v1 = vld [vmem:[#allocation5 + $0x248] sm:$0xff]  ;;  %v141_v3 = vld [vmem:[#allocation5 + $0x2d8] sm:$0xff]  ;;  %v124_v6 = vld [vmem:[#allocation5 + $0x250] sm:$0xff] }
  0x45   :  { %652 = vmatprep.subr.bf16.mxu1 %v651_v30  ;;  %v673_v4 = vpack.c.bf16 %v123_v1, %v122_v0  ;;  %v675_v5 = vpack.c.bf16 %v141_v3, %v140_v2  ;;  %v125_v7 = vld [vmem:[#allocation5 + $0x258] sm:$0xff]  ;;  %v142_v8 = vld [vmem:[#allocation5 + $0x2e0] sm:$0xff]  ;;  %v143_v9 = vld [vmem:[#allocation5 + $0x2e8] sm:$0xff] }
  0x46   :  { %622 = vmatpush3.bf16.msra.mxu0 %v621_v34  ;;  %v677_v10 = vpack.c.bf16 %v125_v7, %v124_v6  ;;  %v679_v11 = vpack.c.bf16 %v143_v9, %v142_v8  ;;  %v126_v12 = vld [vmem:[#allocation5 + $0x260] sm:$0xff]  ;;  %v127_v13 = vld [vmem:[#allocation5 + $0x268] sm:$0xff]  ;;  %v144_v14 = vld [vmem:[#allocation5 + $0x2f0] sm:$0xff] }
  0x47   :  { %656 = vmatprep.subr.bf16.mxu0 %v655_v36  ;;  %v145_v15 = vld [vmem:[#allocation5 + $0x2f8] sm:$0xff]  ;;  %v681_v16 = vpack.c.bf16 %v127_v13, %v126_v12  ;;  %v128_v18 = vld [vmem:[#allocation5 + $0x270] sm:$0xff] }
  0x48   :  { %654 = vmatpush3.bf16.msra.mxu1 %v653_v35  ;;  %v683_v17 = vpack.c.bf16 %v145_v15, %v144_v14  ;;  %v129_v19 = vld [vmem:[#allocation5 + $0x278] sm:$0xff]  ;;  %v48_v21 = vld [vmem:[#allocation2 + $0x20] sm:$0xff] }
  0x49   :  { %218 = vmatmul.mubr.f32.vlgmr.msra.gmra.mrb[0].mxu0 %v44_v41  ;;  %v685_v20 = vpack.c.bf16 %v129_v19, %v128_v18  ;;  %v363_v22 = vld [vmem:[%s858_s3] sm:$0xff]  ;;  %586 = vmatprep.subr.mxu1 %v778_v47 }
  0x4a   :  { %658 = vmatpush3.bf16.msra.mxu0 %v657_v42  ;;  %357 = vmatprep.mubr.f32.mxu0 %v49_v49  ;;  %v376_v23 = vmul.f32 %v363_v22, %v363_v22  ;;  %v478_v25 = vld [vmem:[%s857_s2] ss:$0 sm:$0xff]  ;;  %s780_s2 = smov [#allocation7]  }
  0x4b   :  { %288 = vmatmul.mubr.f32.vlgmr.msra.gmra.mrb[0].mxu1 %v46_v43  ;;  %660 = vmatprep.subr.bf16.mxu0 %v659_v44  ;;  %s468_s3 = sshll.u32 %s780_s2, 4  ;;  %s469_s3 = int_to_ptr.vmem [resolvable:$true] %s468_s3 }
  0x4c   :  { %377 = vadd.xlane.f32.xlu0 %v376_v23  ;;  %588 = vmatprep.mubr.msk.f32.mxu1 %vm779_vm2, %v778_v47  ;;  %s746_s17 = scalar_lea.vmem %s469_s3, 128  ;;  %p751_p3 = scmp.lt.s32.totalorder %s469_s3, %s469_s3 }
  0x4d   :  { %p747_p2 = scmp.ne.s32.totalorder %s469_s3, %s746_s17  ;;  %p752_p4 = scmp.lt.s32.totalorder %s746_s17, %s746_s17 }
  0x4e   :  { %662 = vmatpush3.bf16.msra.mxu0 %v661_v50 }
  0x4f   :  { %664 = vmatprep.subr.bf16.mxu0 %v663_v51  ;;  %p753_p5 = por %p752_p4, %p751_p3 }
  0x51   :  { %p754_p6 = pnand %p753_p5, %p747_p2 }
  0x52   :  { %666 = vmatpush3.bf16.msra.mxu0 %v665_v56 }
  0x53   :  { %668 = vmatprep.subr.bf16.mxu0 %v667_v57 }
  0x56   :  { %670 = vmatpush3.bf16.msra.mxu0 %v669_v62 }
  0x57   :  { %672 = vmatprep.subr.bf16.mxu0 %v671_v63 }
  0x5a   :  { %674 = vmatpush3.bf16.msra.mxu0 %v673_v4 }
  0x5b   :  { %676 = vmatprep.subr.bf16.mxu0 %v675_v5 }
  0x5e   :  { %678 = vmatpush3.bf16.msra.mxu0 %v677_v10 }
  0x5f   :  { %680 = vmatprep.subr.bf16.mxu0 %v679_v11 }
  0x62   :  { %682 = vmatpush3.bf16.msra.mxu0 %v681_v16 }
  0x63   :  { %684 = vmatprep.subr.bf16.mxu0 %v683_v17 }
  0x66   :  { %686 = vmatpush3.bf16.msra.mxu0 %v685_v20 }
  0x69   :  { %358 = vmatmul.mubr.f32.vlgmr.msra.gmra.mrb[2].mxu0 %v48_v21 }
  0xd9   :  { %v378_v33 = vpop.xlane.xlu0 %377 }
  0xda   :  { %694 = vrsqrt.f32 %v378_v33  ;;  %vm381_vm0 = vcmp.eq.f32.partialorder %v378_v33, inf  ;;  %v384_v41 = vand.u32 2147483648, %v378_v33  ;;  %vm383_vm1 = vcmp.eq.f32.partialorder %v378_v33, 0.0 }
  0xe4   :  { %v695_v37 = vpop.eup %694 }
  0xe5   :  { %v380_v40 = vmul.f32 %v695_v37, %v378_v33 }
  0xe7   :  { %v382_v42 = vsel %vm381_vm0, %v378_v33, %v380_v40 }
  0xe8   :  { %v385_v43 = vsel %vm383_vm1, %v384_v41, %v382_v42 }
  0xe9   :  { %v386_v44 = vadd.f32 1e-08, %v385_v43 }
  0xeb   :  { %696 = vrcp.f32 %v386_v44 }
  0xf5   :  { %v697_v45 = vpop.eup %696 }
  0xf6   :  { %v389_v46 = vmul.f32 %v697_v45, %v363_v22 }
  0xf8   :  { %587 = vmatpush3.xpose.msra.mxu1 %v389_v46 }
 0x11c   :  { %v511_v24 = vpop.f32.mrb[0].mxu0 }
 0x11d   :  { %v512_v26 = vpop.f32.mrb[1].mxu0 }
 0x11e   :  { %v546_v27 = vpop.f32.mrb[0].mxu1  ;;  %v513_v28 = vadd.f32 %v512_v26, %v511_v24 }
 0x11f   :  { %v547_v29 = vpop.f32.mrb[1].mxu1 }
 0x120   :  { %v548_v30 = vadd.f32 %v547_v29, %v546_v27  ;;  %v220_v31 = vadd.f32 %v513_v28, %v478_v25 }
 0x122   :  { %v290_v32 = vadd.f32 %v548_v30, %v220_v31 }
 0x13c   :  { %v581_v34 = vpop.f32.mrb[2].mxu0 }
 0x13d   :  { %v582_v35 = vpop.f32.mrb[3].mxu0 }
 0x13e   :  { %v583_v36 = vadd.f32 %v582_v35, %v581_v34 }
 0x140   :  { %v360_v38 = vadd.f32 %v583_v36, %v290_v32 }
 0x142   :  { %v364_v39 = vmul.f32 %v360_v38, %v360_v38 }
 0x144   :  { %365 = vadd.xlane.f32.xlu0 %v364_v39 }
 0x1d1   :  { %v366_v48 = vpop.xlane.xlu0 %365 }
 0x1d2   :  { %698 = vrsqrt.f32 %v366_v48  ;;  %vm369_vm3 = vcmp.eq.f32.partialorder %v366_v48, inf  ;;  %v372_v51 = vand.u32 2147483648, %v366_v48  ;;  %vm371_vm4 = vcmp.eq.f32.partialorder %v366_v48, 0.0 }
 0x1dc   :  { %v699_v49 = vpop.eup %698 }
 0x1dd   :  { %v368_v50 = vmul.f32 %v699_v49, %v366_v48 }
 0x1df   :  { %v370_v52 = vsel %vm369_vm3, %v366_v48, %v368_v50 }
 0x1e0   :  { %v373_v53 = vsel %vm371_vm4, %v372_v51, %v370_v52 }
 0x1e1   :  { %v374_v54 = vadd.f32 1e-08, %v373_v53 }
 0x1e3   :  { %700 = vrcp.f32 %v374_v54 }
 0x1ed   :  { %v701_v55 = vpop.eup %700 }
 0x1ee   :  { %v388_v56 = vmul.f32 %v701_v55, %v360_v38 }
 0x1f0   :  { %589 = vmatmul.mubr.f32.vlgmr.msra.gmra.mrb[2].mxu1 %v388_v56 }
 0x2c3   :  { %v456_v57 = vpop.f32.mrb[2].mxu1 }
 0x2c4   :  { %v590_v58 = vpop.f32.mrb[3].mxu1  ;;  %461 = vst.msk [vmem:[#allocation7] sm:$0xff] %vm460_vm5, %v456_v57 }
 0x2c5   :  { %757 = shalt.err (!%p754_p6)
}
 0x2c6   :  { %s758_s20 = scalar_lea.hbm %s859_s4, 128 }
 0x2c7   :  { %p759_p7 = scmp.ne.s32.totalorder %s859_s4, %s758_s20  ;;  %p762_p8 = scmp.lt.u32.totalorder %s758_s20, %s859_s4 }
 0x2c9   :  { %p764_p9 = pnand %p762_p8, %p759_p7 }
 0x2cb   :  { %767 = shalt.err (!%p764_p9)
}
 0x2cc   :  { %471 = dma.vmem_to_hbm [thread:$0]  %s469_s3, 128, %s859_s4, [#allocation4]  }
 0x2cd   :  { %772 = dma.done.wait [#allocation4], 128  }
 0x2ce   :  { %773 = vsyncadd [#allocation4], 4294967168 }
 0x2cf   :  { %475 = vsyncpa [#allocation3], 1 }
 0x2d0   :  { %476 = vsyncpa [#allocation6], 1 }
 0x2d1   :  { %477 = vsyncpa [#allocation4], 1 }

</bundles_post_ra>
